<compile_context>
chip_gen: v5e
topology: v5e:2x2
jax: 0.10.0
libtpu: 0.0.40
codegen_flags: <defaults>
</compile_context>

<pallas_src>
import functools

import jax
import jax.numpy as jnp
from jax.experimental import pallas as pl
from jax.experimental.pallas import tpu as pltpu


# ----------------------------- sizing helpers ------------------------------

def _round_up(a, b):
    return ((a + b - 1) // b) * b


def _sublane_multiple(dtype):
    # f32 -> 8 rows/sublane-tile, bf16 -> 16, int8/fp8 -> 32.
    bits = jnp.dtype(dtype).itemsize * 8
    return 8 * max(1, 32 // bits)


def _vmem_capacity_bytes():
    try:
        info = pltpu.get_tpu_info()
        cap = getattr(info, "vmem_capacity_bytes", None)
        if cap:
            return int(cap)
    except Exception:
        pass
    # Conservative fallback = v7x per-TC VMEM (64 MiB); safe on v5e/v6e too.
    return 64 * 1024 * 1024


def _vmem_limit_bytes():
    # Explicit scoped-VMEM limit: 75% of physical, capped at 96 MiB
    # (v7x -> ~48 MiB, v5e/v6e -> 96 MiB; default scoped limits are lower).
    return min(int(_vmem_capacity_bytes() * 0.75), 96 * 1024 * 1024)


def _pick_tile_rows(rows, bytes_per_row_all_buffers, dtype, vmem_budget):
    """Largest row tile that fits the VMEM budget, sublane-aligned, <=1024."""
    sub = _sublane_multiple(dtype)
    cap_by_vmem = max(sub, vmem_budget // max(int(bytes_per_row_all_buffers), 1))
    tile = min(1024, cap_by_vmem, _round_up(rows, sub))
    tile = max(sub, (tile // sub) * sub)
    return int(tile)


# ------------------------------- LayerNorm ---------------------------------

def _layer_norm_kernel(x_ref, g_ref, b_ref, o_ref, *, eps, features, features_padded):
    # x_ref: (tile_rows, features_padded); g_ref/b_ref: (1, features_padded)
    x = x_ref[...].astype(jnp.float32)

    # Padded feature lanes (only when d_model % 128 != 0) are zero-filled by the
    # wrapper, so the raw sum is already correct; only `d` needs masking.
    mean = jnp.sum(x, axis=-1, keepdims=True) * jnp.float32(1.0 / features)
    d = x - mean
    if features_padded != features:
        lane = jax.lax.broadcasted_iota(jnp.int32, x.shape, dimension=1)
        d = jnp.where(lane < features, d, 0.0)

    # Unbiased variance (ddof=1), matching torch.Tensor.std default.
    var = jnp.sum(d * d, axis=-1, keepdims=True) * jnp.float32(1.0 / (features - 1))
    denom = jnp.sqrt(var) + jnp.float32(eps)          # eps on std, as in torch module

    # EUP approx reciprocal (free slot) + one Newton step on the (tile,1) column
    # to recover ~full f32 accuracy; replaces a full-width broadcast divide.
    inv = pl.reciprocal(denom, approx=True)
    inv = inv * (jnp.float32(2.0) - denom * inv)

    g = g_ref[...].astype(jnp.float32)
    b = b_ref[...].astype(jnp.float32)
    o_ref[...] = (g * (d * inv) + b).astype(o_ref.dtype)


def layer_norm(x, a_2, b_2, eps=1e-6, tile_rows=None):
    """x: (..., features). a_2, b_2: (features,)."""
    features = x.shape[-1]
    orig_shape = x.shape
    x2 = x.reshape(-1, features)
    rows = x2.shape[0]

    # Lane-dense feature axis: pad to a multiple of 128 only if needed
    # (real transformer d_model is already a multiple of 128; this guards the
    # tiny test case). Padded lanes are masked inside the kernel.
    feat_p = _round_up(features, 128)
    if feat_p != features:
        x2 = jnp.pad(x2, ((0, 0), (0, feat_p - features)))
        g2 = jnp.pad(a_2.reshape(1, features), ((0, 0), (0, feat_p - features)))
        b2 = jnp.pad(b_2.reshape(1, features), ((0, 0), (0, feat_p - features)))
    else:
        g2 = a_2.reshape(1, features)
        b2 = b_2.reshape(1, features)

    vmem_limit = _vmem_limit_bytes()
    if tile_rows is None:
        in_b = jnp.dtype(x2.dtype).itemsize
        out_b = jnp.dtype(x.dtype).itemsize
        # double-buffered in/out blocks + headroom for f32 temporaries
        bytes_per_row = feat_p * (2 * in_b + 2 * out_b + 16)
        tile_rows = _pick_tile_rows(rows, bytes_per_row, x.dtype, vmem_limit // 2)

    # No wrapper-side row concatenate: cdiv grid lets Pallas mask the partial
    # trailing block (rows are independent, so edge padding is harmless).
    grid = (pl.cdiv(rows, tile_rows),)
    kernel = functools.partial(
        _layer_norm_kernel, eps=float(eps), features=features, features_padded=feat_p
    )

    out = pl.pallas_call(
        kernel,
        out_shape=jax.ShapeDtypeStruct((rows, feat_p), x.dtype),
        grid_spec=pltpu.PrefetchScalarGridSpec(
            num_scalar_prefetch=0,
            grid=grid,
            in_specs=[
                pl.BlockSpec((tile_rows, feat_p), lambda i: (i, 0)),
                pl.BlockSpec((1, feat_p), lambda i: (0, 0)),
                pl.BlockSpec((1, feat_p), lambda i: (0, 0)),
            ],
            out_specs=pl.BlockSpec((tile_rows, feat_p), lambda i: (i, 0)),
        ),
        compiler_params=pltpu.CompilerParams(
            dimension_semantics=("parallel",),      # lets v7x shard rows across 2 TCs
            vmem_limit_bytes=vmem_limit,
        ),
    )(x2, g2, b2)

    if feat_p != features:
        out = out[:, :features]
    return out.reshape(orig_shape)


# -------------------- fused residual + dropout + add -----------------------

def _splitmix32(z):
    """Stateless 32-bit mixer (splitmix32). All ops are plain u32 VPU ops, so it
    lowers on Mosaic and in interpret mode alike."""
    z = (z + jnp.uint32(0x9E3779B9)).astype(jnp.uint32)
    z = ((z ^ (z >> jnp.uint32(16))) * jnp.uint32(0x85EBCA6B)).astype(jnp.uint32)
    z = ((z ^ (z >> jnp.uint32(13))) * jnp.uint32(0xC2B2AE35)).astype(jnp.uint32)
    return (z ^ (z >> jnp.uint32(16))).astype(jnp.uint32)


def _residual_dropout_add_kernel(seed_ref, x_ref, y_ref, o_ref, *, p, tile_rows, features):
    x = x_ref[...].astype(jnp.float32)
    y = y_ref[...].astype(jnp.float32)
    if p > 0.0:
        # Counter-based PRNG: one hash per element, keyed on the *global*
        # (row, col) index so every grid step draws independent bits.
        row = jax.lax.broadcasted_iota(jnp.int32, y.shape, dimension=0)
        col = jax.lax.broadcasted_iota(jnp.int32, y.shape, dimension=1)
        row = row + pl.program_id(0) * tile_rows
        ctr = (row * features + col).astype(jnp.uint32)
        seed = seed_ref[0].astype(jnp.uint32)
        bits = _splitmix32(ctr ^ _splitmix32(seed))
        # Top 24 bits -> uniform in [0, 1).
        u = (bits >> jnp.uint32(8)).astype(jnp.int32).astype(jnp.float32)
        u = u * jnp.float32(1.0 / (1 << 24))
        keep = u >= jnp.float32(p)
        y = jnp.where(keep, y * jnp.float32(1.0 / (1.0 - p)), 0.0)
    o_ref[...] = (x + y).astype(o_ref.dtype)


def residual_dropout_add(x, y, *, p=0.0, seed=0, tile_rows=None):
    """out = x + dropout_p(y), fused in a single HBM pass."""
    assert x.shape == y.shape
    features = x.shape[-1]
    orig_shape = x.shape
    x2 = x.reshape(-1, features)
    y2 = y.reshape(-1, features)
    rows = x2.shape[0]

    vmem_limit = _vmem_limit_bytes()
    if tile_rows is None:
        bpr = features * (
            2 * jnp.dtype(x2.dtype).itemsize
            + 2 * jnp.dtype(y2.dtype).itemsize
            + 2 * jnp.dtype(x.dtype).itemsize
            + 12  # f32 temps / random bits headroom
        )
        tile_rows = _pick_tile_rows(rows, bpr, x.dtype, vmem_limit // 2)

    seeds = jnp.asarray([seed], dtype=jnp.int32)
    kernel = functools.partial(
        _residual_dropout_add_kernel, p=float(p), tile_rows=int(tile_rows),
        features=int(features),
    )

    out = pl.pallas_call(
        kernel,
        out_shape=jax.ShapeDtypeStruct((rows, features), x.dtype),
        grid_spec=pltpu.PrefetchScalarGridSpec(
            num_scalar_prefetch=1,   # dropout seed lives in SMEM
            grid=(pl.cdiv(rows, tile_rows),),
            in_specs=[
                pl.BlockSpec((tile_rows, features), lambda i, *_: (i, 0)),
                pl.BlockSpec((tile_rows, features), lambda i, *_: (i, 0)),
            ],
            out_specs=pl.BlockSpec((tile_rows, features), lambda i, *_: (i, 0)),
        ),
        compiler_params=pltpu.CompilerParams(
            dimension_semantics=("parallel",),
            vmem_limit_bytes=vmem_limit,
        ),
    )(seeds, x2, y2)
    return out.reshape(orig_shape)


# --------------------------- SublayerConnection ----------------------------

def sublayer_connection(x, sublayer, a_2, b_2, *, eps=1e-6, dropout_p=0.0,
                        dropout_seed=0, deterministic=True):
    """out = x + dropout(sublayer(layer_norm(x))) — pre-norm residual block."""
    normed = layer_norm(x, a_2, b_2, eps=eps)
    y = sublayer(normed)                     # arbitrary user JAX function
    p = 0.0 if deterministic else float(dropout_p)
    return residual_dropout_add(x, y, p=p, seed=dropout_seed)


# ----------------------------------- test ----------------------------------

if __name__ == "__main__":
    batch, seq, features = 2, 8, 32
    key = jax.random.PRNGKey(0)
    kx, kw = jax.random.split(key)
    x = jax.random.normal(kx, (batch, seq, features), dtype=jnp.float32)
    w = jax.random.normal(kw, (features, features), dtype=jnp.float32) * 0.1

    a_2 = jnp.ones((features,), dtype=jnp.float32)   # module init: ones
    b_2 = jnp.zeros((features,), dtype=jnp.float32)  # module init: zeros
    eps = 1e-6
    dropout_p = 0.1

    sublayer = lambda t: jnp.dot(t, w)               # simple deterministic sublayer

    # Deterministic forward (dropout disabled, i.e. module.eval()).
    out = sublayer_connection(x, sublayer, a_2, b_2, eps=eps,
                              dropout_p=dropout_p, deterministic=True)
    out = jax.block_until_ready(out)

    # Pure-JAX reference with torch semantics (unbiased std, eps added to std).
    mean = jnp.mean(x, axis=-1, keepdims=True)
    d = x - mean
    std = jnp.sqrt(jnp.sum(d * d, axis=-1, keepdims=True) / (features - 1))
    normed_ref = a_2 * d / (std + eps) + b_2
    ref = x + sublayer(normed_ref)

    assert out.shape == x.shape and out.dtype == x.dtype
    assert jnp.allclose(out, ref, atol=1e-4, rtol=1e-4), float(jnp.max(jnp.abs(out - ref)))

    # Training-mode smoke test: exercises the fused in-kernel dropout path.
    out_train = sublayer_connection(x, sublayer, a_2, b_2, eps=eps,
                                    dropout_p=dropout_p, deterministic=False,
                                    dropout_seed=1234)
    out_train = jax.block_until_ready(out_train)
    assert out_train.shape == x.shape
    assert bool(jnp.all(jnp.isfinite(out_train)))
    # Dropout keeps most elements and zeroes the rest of the sublayer branch:
    # kept elements satisfy out_train == x + y/(1-p); dropped ones equal x.
    y_branch = sublayer(layer_norm(x, a_2, b_2, eps=eps))
    kept_match = jnp.isclose(out_train, x + y_branch / (1.0 - dropout_p), atol=1e-4, rtol=1e-4)
    dropped_match = jnp.isclose(out_train, x, atol=1e-4, rtol=1e-4)
    assert bool(jnp.all(kept_match | dropped_match))
    frac_dropped = float(jnp.mean(dropped_match.astype(jnp.float32)))
    assert 0.0 < frac_dropped < 0.5, frac_dropped   # ~dropout_p, loose bound

    print("KERNEL_OK")
</pallas_src>

<mosaic_0001>
module attributes {stable_mosaic.version = 11 : i64} {
  func.func @_layer_norm_kernel(%arg0: i32, %arg1: memref<16x128xf32, #tpu.memory_space<vmem>>, %arg2: memref<1x128xf32, #tpu.memory_space<vmem>>, %arg3: memref<1x128xf32, #tpu.memory_space<vmem>>, %arg4: memref<16x128xf32, #tpu.memory_space<vmem>>) attributes {dimension_semantics = [#tpu.dimension_semantics<parallel>], iteration_bounds = array<i64: 1>, scalar_prefetch = 0 : i64, scratch_operands = 0 : i64, tpu.core_type = #tpu.core_type<tc>, window_params = [{transform_indices = @transform_0, window_bounds = array<i64: 16, 128>}, {pipeline_mode = #tpu.pipeline_mode<synchronous>, transform_indices = @transform_1, window_bounds = array<i64: 1, 128>}, {pipeline_mode = #tpu.pipeline_mode<synchronous>, transform_indices = @transform_2, window_bounds = array<i64: 1, 128>}, {transform_indices = @transform_3, window_bounds = array<i64: 16, 128>}]} {
    %c0 = arith.constant 0 : index
    %c0_0 = arith.constant 0 : index
    %0 = vector.load %arg1[%c0, %c0_0] : memref<16x128xf32, #tpu.memory_space<vmem>>, vector<16x128xf32>
    %cst = arith.constant dense<0.000000e+00> : vector<16xf32>
    %1 = vector.multi_reduction <add>, %0, %cst [1] : vector<16x128xf32> to vector<16xf32>
    %2 = vector.shape_cast %1 : vector<16xf32> to vector<16x1xf32>
    %cst_1 = arith.constant 3.125000e-02 : f32
    %3 = vector.broadcast %cst_1 : f32 to vector<16x1xf32>
    %4 = arith.mulf %2, %3 : vector<16x1xf32>
    %5 = vector.broadcast %4 : vector<16x1xf32> to vector<16x128xf32>
    %6 = arith.subf %0, %5 : vector<16x128xf32>
    %7 = tpu.iota {dimensions = array<i32: 1>} : vector<16x128xi32>
    %c32_i32 = arith.constant 32 : i32
    %8 = vector.broadcast %c32_i32 : i32 to vector<16x128xi32>
    %9 = arith.cmpi slt, %7, %8 : vector<16x128xi32>
    %cst_2 = arith.constant 0.000000e+00 : f32
    %10 = vector.broadcast %cst_2 : f32 to vector<16x128xf32>
    %11 = arith.select %9, %6, %10 : vector<16x128xi1>, vector<16x128xf32>
    %12 = arith.mulf %11, %11 : vector<16x128xf32>
    %cst_3 = arith.constant dense<0.000000e+00> : vector<16xf32>
    %13 = vector.multi_reduction <add>, %12, %cst_3 [1] : vector<16x128xf32> to vector<16xf32>
    %14 = vector.shape_cast %13 : vector<16xf32> to vector<16x1xf32>
    %cst_4 = arith.constant 0.0322580636 : f32
    %15 = vector.broadcast %cst_4 : f32 to vector<16x1xf32>
    %16 = arith.mulf %14, %15 : vector<16x1xf32>
    %17 = math.sqrt %16 : vector<16x1xf32>
    %cst_5 = arith.constant 9.99999997E-7 : f32
    %18 = vector.broadcast %cst_5 : f32 to vector<16x1xf32>
    %19 = arith.addf %17, %18 : vector<16x1xf32>
    %20 = tpu.reciprocal %19 {approx = true} : vector<16x1xf32> -> vector<16x1xf32>
    %21 = arith.mulf %19, %20 : vector<16x1xf32>
    %cst_6 = arith.constant 2.000000e+00 : f32
    %22 = vector.broadcast %cst_6 : f32 to vector<16x1xf32>
    %23 = arith.subf %22, %21 : vector<16x1xf32>
    %24 = arith.mulf %20, %23 : vector<16x1xf32>
    %c0_7 = arith.constant 0 : index
    %c0_8 = arith.constant 0 : index
    %25 = vector.load %arg2[%c0_7, %c0_8] : memref<1x128xf32, #tpu.memory_space<vmem>>, vector<1x128xf32>
    %c0_9 = arith.constant 0 : index
    %c0_10 = arith.constant 0 : index
    %26 = vector.load %arg3[%c0_9, %c0_10] : memref<1x128xf32, #tpu.memory_space<vmem>>, vector<1x128xf32>
    %27 = vector.broadcast %24 : vector<16x1xf32> to vector<16x128xf32>
    %28 = arith.mulf %11, %27 : vector<16x128xf32>
    %29 = vector.broadcast %25 : vector<1x128xf32> to vector<16x128xf32>
    %30 = arith.mulf %29, %28 : vector<16x128xf32>
    %31 = vector.broadcast %26 : vector<1x128xf32> to vector<16x128xf32>
    %32 = arith.addf %30, %31 : vector<16x128xf32>
    %c0_11 = arith.constant 0 : index
    %c0_12 = arith.constant 0 : index
    %33 = vector.load %arg4[%c0_11, %c0_12] : memref<16x128xf32, #tpu.memory_space<vmem>>, vector<16x128xf32>
    tpu.vector_store %arg4[%c0_11, %c0_12], %32 {strides = array<i32>} : memref<16x128xf32, #tpu.memory_space<vmem>>, vector<16x128xf32>,
    return
  }
  func.func @transform_0(%arg0: i32) -> (i32, i32) {
    %c0_i32 = arith.constant 0 : i32
    %c0_i32_0 = arith.constant 0 : i32
    return %arg0, %c0_i32 : i32, i32
  }
  func.func @transform_1(%arg0: i32) -> (i32, i32) {
    %c0_i32 = arith.constant 0 : i32
    %c0_i32_0 = arith.constant 0 : i32
    %c0_i32_1 = arith.constant 0 : i32
    return %c0_i32, %c0_i32_0 : i32, i32
  }
  func.func @transform_2(%arg0: i32) -> (i32, i32) {
    %c0_i32 = arith.constant 0 : i32
    %c0_i32_0 = arith.constant 0 : i32
    %c0_i32_1 = arith.constant 0 : i32
    return %c0_i32, %c0_i32_0 : i32, i32
  }
  func.func @transform_3(%arg0: i32) -> (i32, i32) {
    %c0_i32 = arith.constant 0 : i32
    %c0_i32_0 = arith.constant 0 : i32
    return %arg0, %c0_i32 : i32, i32
  }
}

</mosaic_0001>

<bundles_post_ra>
// kernel: tpu_custom_call.1
= control target key start
LH: loop header
LB: loop body
LE: loop exit
PB: predicated region body
PF: predicated region fallthrough
CT: control target
= control target key end

     0   :  { %8 = vsyncpa [#allocation3], 0  ;;  %s274_s0 = inlined_call_operand.hbm [shape: f32[16,128], index: 0, kind: input, shape index: {}]   ;;  %s275_s1 = inlined_call_operand.hbm [shape: f32[1,128], index: 1, kind: input, shape index: {}]   ;;  %s276_s2 = inlined_call_operand.vmem [shape: f32[1,128], index: 2, kind: input, shape index: {}]   ;;  %s277_s3 = inlined_call_operand.hbm [shape: f32[16,128], index: 3, kind: output, shape index: {}]  }
   0x1   :  { %9 = vsyncpa [#allocation6], 0 }
   0x2   :  { %10 = vsyncpa [#allocation4], 0  ;;  %s15_s14 = sshll.u32 %s274_s0, 4  ;;  %s231_s15 = smov [#allocation2]   ;;  %s16_s14 = int_to_ptr.hbm [resolvable:$true] %s15_s14 }
   0x3   :  { %s17_s16 = sshll.u32 %s231_s15, 4  ;;  %s29_s19 = sshll.u32 %s275_s1, 4  ;;  %s18_s16 = int_to_ptr.vmem [resolvable:$true] %s17_s16  ;;  %s30_s19 = int_to_ptr.hbm [resolvable:$true] %s29_s19 }
   0x4   :  { %s232_s20 = smov 128   ;;  %s233_s21 = smov 8  }
   0x5   :  { %23 = dma.hbm_to_vmem [thread:$0]  %s16_s14, 256, %s18_s16, [#allocation3], %s232_s20, %s232_s20, %s233_s21  }
   0x6   :  { %s234_s22 = smov [#allocation5]  }
   0x7   :  { %s31_s23 = sshll.u32 %s234_s22, 4  ;;  %s32_s23 = int_to_ptr.vmem [resolvable:$true] %s31_s23 }
   0x8   :  { %34 = dma.hbm_to_vmem [thread:$0]  %s30_s19, 16, %s32_s23, [#allocation6]  }
   0x9   :  { %225 = dma.done.wait [#allocation3], 256  }
   0xa   :  { %226 = vsyncadd [#allocation3], 4294967040 }
   0xb   :  { %227 = dma.done.wait [#allocation6], 16  }
   0xc   :  { %228 = vsyncadd [#allocation6], 4294967280  ;;  %v45_v0 = vld [vmem:[#allocation2] sm:$0xff]  ;;  %v46_v1 = vld [vmem:[#allocation2 + $0x8] sm:$0xff]  ;;  %v55_v2 = vlaneseq  ;;  %s235_s24 = smov [#allocation7]   ;;  %s124_s28 = sshll.u32 %s277_s3, 4  ;;  %s125_s28 = int_to_ptr.hbm [resolvable:$true] %s124_s28 }
   0xd   :  { %47 = vadd.xlane.f32.xlu0 %v45_v0  ;;  %v143_v44 = vld [vmem:[#allocation5] ss:$0 sm:$0xff]  ;;  %v144_v46 = vld [vmem:[%s276_s2] ss:$0 sm:$0xff]  ;;  %s122_s25 = sshll.u32 %s235_s24, 4  ;;  %s123_s25 = int_to_ptr.vmem [resolvable:$true] %s122_s25 }
   0xe   :  { %v56_v3 = vand.u32 127, %v55_v2 }
  0x10   :  { %vm57_vm0 = vcmp.lt.s32.totalorder %v56_v3, 32 }
  0x15   :  { %49 = vadd.xlane.f32.xlu0 %v46_v1 }
  0x80   :  { %v48_v4 = vpop.xlane.xlu0 %47 }
  0x81   :  { %v51_v5 = vmul.f32 0.03125, %v48_v4 }
  0x83   :  { %v53_v6 = vsub.f32 %v45_v0, %v51_v5 }
  0x85   :  { %v58_v7 = vsel %vm57_vm0, %v53_v6, 0.0 }
  0x86   :  { %v60_v8 = vmul.f32 %v58_v7, %v58_v7 }
  0x88   :  { %62 = vadd.xlane.f32.xlu1 %v60_v8  ;;  %v50_v9 = vpop.xlane.xlu0 %49 }
  0x89   :  { %v52_v10 = vmul.f32 0.03125, %v50_v9 }
  0x8b   :  { %v54_v11 = vsub.f32 %v46_v1, %v52_v10 }
  0x8d   :  { %v59_v12 = vsel %vm57_vm0, %v54_v11, 0.0 }
  0x8e   :  { %v61_v13 = vmul.f32 %v59_v12, %v59_v12 }
  0x90   :  { %64 = vadd.xlane.f32.xlu1 %v61_v13 }
  0xfb   :  { %v63_v14 = vpop.xlane.xlu1 %62 }
  0xfc   :  { %v66_v15 = vmul.f32 0.032258064, %v63_v14 }
  0xfe   :  { %145 = vrsqrt.f32 %v66_v15  ;;  %vm75_vm1 = vcmp.eq.f32.partialorder %v66_v15, inf  ;;  %v78_v28 = vand.u32 2147483648, %v66_v15  ;;  %vm77_vm2 = vcmp.eq.f32.partialorder %v66_v15, 0.0 }
 0x103   :  { %v65_v16 = vpop.xlane.xlu1 %64 }
 0x104   :  { %v146_v17 = vpop.eup %145  ;;  %v67_v18 = vmul.f32 0.032258064, %v65_v16 }
 0x105   :  { %v69_v19 = vmul.f32 %v146_v17, %v66_v15 }
 0x106   :  { %147 = vrsqrt.f32 %v67_v18  ;;  %vm87_vm3 = vcmp.eq.f32.partialorder %v67_v18, inf  ;;  %v90_v36 = vand.u32 2147483648, %v67_v18  ;;  %vm89_vm4 = vcmp.eq.f32.partialorder %v67_v18, 0.0 }
 0x107   :  { %v70_v20 = vmul.f32 %v146_v17, %v69_v19 }
 0x109   :  { %v71_v21 = vmul.f32 0.5, %v70_v20 }
 0x10b   :  { %v72_v22 = vsub.f32 1.5, %v71_v21 }
 0x10c   :  { %v148_v23 = vpop.eup %147 }
 0x10d   :  { %v73_v24 = vmul.f32 %v146_v17, %v72_v22  ;;  %v81_v25 = vmul.f32 %v148_v23, %v67_v18 }
 0x10f   :  { %v74_v26 = vmul.f32 %v73_v24, %v66_v15  ;;  %v82_v27 = vmul.f32 %v148_v23, %v81_v25 }
 0x111   :  { %v83_v29 = vmul.f32 0.5, %v82_v27  ;;  %v76_v30 = vsel %vm75_vm1, %v66_v15, %v74_v26 }
 0x112   :  { %v79_v31 = vsel %vm77_vm2, %v78_v28, %v76_v30 }
 0x113   :  { %v84_v32 = vsub.f32 1.5, %v83_v29  ;;  %v92_v33 = vadd.f32 1e-06, %v79_v31 }
 0x115   :  { %v85_v34 = vmul.f32 %v148_v23, %v84_v32  ;;  %149 = vrcp.f32 %v92_v33 }
 0x117   :  { %v86_v35 = vmul.f32 %v85_v34, %v67_v18 }
 0x119   :  { %v88_v37 = vsel %vm87_vm3, %v67_v18, %v86_v35 }
 0x11a   :  { %v91_v38 = vsel %vm89_vm4, %v90_v36, %v88_v37 }
 0x11b   :  { %v150_v39 = vpop.eup %149  ;;  %v93_v40 = vadd.f32 1e-06, %v91_v38 }
 0x11c   :  { %v96_v41 = vmul.f32 %v150_v39, %v92_v33 }
 0x11d   :  { %151 = vrcp.f32 %v93_v40 }
 0x11e   :  { %v98_v42 = vsub.f32 2.0, %v96_v41 }
 0x120   :  { %v100_v43 = vmul.f32 %v150_v39, %v98_v42 }
 0x122   :  { %v104_v45 = vmul.f32 %v100_v43, %v58_v7 }
 0x123   :  { %v152_v47 = vpop.eup %151 }
 0x124   :  { %v97_v48 = vmul.f32 %v152_v47, %v93_v40  ;;  %v109_v49 = vmul.f32 %v143_v44, %v104_v45 }
 0x126   :  { %v99_v50 = vsub.f32 2.0, %v97_v48  ;;  %v114_v51 = vadd.f32 %v144_v46, %v109_v49 }
 0x128   :  { %v101_v52 = vmul.f32 %v152_v47, %v99_v50  ;;  %116 = vst [vmem:[#allocation7] sm:$0xff] %v114_v51 }
 0x12a   :  { %v105_v53 = vmul.f32 %v101_v52, %v59_v12 }
 0x12c   :  { %v110_v54 = vmul.f32 %v143_v44, %v105_v53 }
 0x12e   :  { %v115_v55 = vadd.f32 %v144_v46, %v110_v54 }
 0x130   :  { %117 = vst [vmem:[#allocation7 + $0x8] sm:$0xff] %v115_v55 }
 0x131   :  { %130 = dma.vmem_to_hbm [thread:$0]  %s123_s25, 256, %s125_s28, [#allocation4], %s232_s20, %s232_s20, %s233_s21  }
 0x132   :  { %229 = dma.done.wait [#allocation4], 256  }
 0x133   :  { %230 = vsyncadd [#allocation4], 4294967040 }
 0x134   :  { %135 = vsyncpa [#allocation3], 1 }
 0x135   :  { %136 = vsyncpa [#allocation6], 1 }
 0x136   :  { %137 = vsyncpa [#allocation4], 1 }

</bundles_post_ra>
